<compile_context>
chip_gen: v7x
topology: tpu7x:2x2x1
jax: 0.10.0
libtpu: 0.0.40
codegen_flags: <defaults>
</compile_context>

<pallas_src>
import functools

import jax
import jax.numpy as jnp
from jax import lax
from jax.experimental import pallas as pl
from jax.experimental.pallas import tpu as pltpu

_EPS = 1e-5


# ----------------------------------------------------------------------------- kernel
def _double_conv_kernel(x_ref, b1_ref, sb1_ref, b2_ref, sb2_ref,
                        mtop_ref, mbot_ref, out_ref, *, down_shift, up_shift):
    """Fused (conv3x3 pad=1 + BN(eval) + ReLU) x 2 over the whole stacked batch.

    x_ref   : (N*H, W*Cin)  f32   rows of all images stacked; lane = x*Cin + ci
    b1_ref  : (3, W*Cin,  W*Cmid) banded conv-1 weights (one matrix per kernel row ky)
    sb1_ref : (2, W*Cmid) f32     row 0 = folded BN scale, row 1 = folded BN bias
    b2_ref  : (3, W*Cmid, W*Cout)
    sb2_ref : (2, W*Cout) f32
    mtop_ref: (N*H, 1) f32        0.0 on the first row of every image, else 1.0
    mbot_ref: (N*H, 1) f32        0.0 on the last  row of every image, else 1.0
    out_ref : (N*H, W*Cout)       lane-dense output
    """
    cdt = b1_ref.dtype                       # MXU operand dtype (f32 or bf16)
    mtop = mtop_ref[...]
    mbot = mbot_ref[...]

    def conv3x3_bn_relu(inp, b_ref, sb_ref):
        # Center tap (ky=1) initializes the accumulator directly (no zeros + add).
        acc = jnp.dot(inp.astype(cdt), b_ref[1],
                      preferred_element_type=jnp.float32)
        # ky=0: output row h reads input row h-1 -> roll rows "down" by one sublane
        # (XLU), then zero the wrapped-in row at each image top.  This is the vertical
        # padding and also prevents cross-image bleed in the stacked-batch layout.
        x_dn = pltpu.roll(inp, shift=down_shift, axis=0) * mtop
        acc = acc + jnp.dot(x_dn.astype(cdt), b_ref[0],
                            preferred_element_type=jnp.float32)
        # ky=2: output row h reads input row h+1 -> roll rows "up" by one.
        x_up = pltpu.roll(inp, shift=up_shift, axis=0) * mbot
        acc = acc + jnp.dot(x_up.astype(cdt), b_ref[2],
                            preferred_element_type=jnp.float32)
        # Folded BatchNorm + conv-bias + ReLU epilogue, kept in f32.
        return jnp.maximum(acc * sb_ref[0:1, :] + sb_ref[1:2, :], 0.0)

    y1 = conv3x3_bn_relu(x_ref[...], b1_ref, sb1_ref)   # intermediate stays on-chip
    y2 = conv3x3_bn_relu(y1, b2_ref, sb2_ref)
    out_ref[...] = y2.astype(out_ref.dtype)


# ----------------------------------------------------------------- weight / param packing
def _band_weights(w_oihw, w_img):
    """Fold the kx taps of a 3x3 conv into block-banded matrices.

    B[ky, xin*Cin + ci, xout*Cout + co] = w[co, ci, ky, xin - xout + 1]
    when |xin - xout| <= 1, else 0 (which also realizes padding=1 along x).
    """
    w = jnp.transpose(w_oihw, (2, 3, 1, 0))              # (ky, kx, Cin, Cout)
    cin, cout = w.shape[2], w.shape[3]
    xin = jnp.arange(w_img)[:, None]                     # (W, 1)
    xout = jnp.arange(w_img)[None, :]                    # (1, W)
    kx = xin - xout + 1                                  # (W, W)
    valid = (kx >= 0) & (kx <= 2)
    kx_c = jnp.clip(kx, 0, 2)
    wg = w[:, kx_c]                                      # (3, W, W, Cin, Cout)
    wg = wg * valid[None, :, :, None, None].astype(w.dtype)
    b = jnp.transpose(wg, (0, 1, 3, 2, 4))               # (3, xin, ci, xout, co)
    return b.reshape(3, w_img * cin, w_img * cout)


def _fold_bn(conv_bias, gamma, beta, mean, var):
    scale = gamma / jnp.sqrt(var + _EPS)
    bias = beta + (conv_bias - mean) * scale
    return scale, bias


def prepare_params(params, w_img, compute_dtype=jnp.float32):
    """Pack DoubleConv params once at module-init time (hoisted out of the forward path).

    params: [(w_oihw, conv_bias, gamma, beta, running_mean, running_var)] * 2
    """
    (w1, b1, g1, bt1, m1, v1), (w2, b2, g2, bt2, m2, v2) = params
    b1m = _band_weights(w1, w_img).astype(compute_dtype)     # (3, W*Cin,  W*Cmid)
    b2m = _band_weights(w2, w_img).astype(compute_dtype)     # (3, W*Cmid, W*Cout)
    s1, o1 = _fold_bn(b1, g1, bt1, m1, v1)
    s2, o2 = _fold_bn(b2, g2, bt2, m2, v2)
    sb1 = jnp.stack([jnp.tile(s1, w_img), jnp.tile(o1, w_img)]).astype(jnp.float32)
    sb2 = jnp.stack([jnp.tile(s2, w_img), jnp.tile(o2, w_img)]).astype(jnp.float32)
    return b1m, sb1, b2m, sb2


# ------------------------------------------------------------------ layout helpers (boundary)
def nchw_to_lanes(x_nchw):
    n, c, h, w = x_nchw.shape
    return jnp.transpose(x_nchw, (0, 2, 3, 1)).reshape(n, h, w * c)


def lanes_to_nchw(x_lanes, c):
    n, h, wc = x_lanes.shape
    return jnp.transpose(x_lanes.reshape(n, h, wc // c, c), (0, 3, 1, 2))


# ----------------------------------------------------- pltpu.roll direction probe (defensive)
_ROLL_IS_NP_CACHE = None


def _roll_matches_np_roll():
    """One-time probe: does pltpu.roll(x, 1, axis=0) follow np.roll semantics?"""
    global _ROLL_IS_NP_CACHE
    if _ROLL_IS_NP_CACHE is None:
        def probe(x_ref, o_ref):
            o_ref[...] = pltpu.roll(x_ref[...], shift=1, axis=0)
        x = jnp.arange(8 * 128, dtype=jnp.float32).reshape(8, 128)
        y = pl.pallas_call(
            probe, out_shape=jax.ShapeDtypeStruct((8, 128), jnp.float32))(x)
        _ROLL_IS_NP_CACHE = bool(jnp.allclose(y[1], x[0]))
    return _ROLL_IS_NP_CACHE


# ----------------------------------------------------------------------------- forward
@functools.partial(jax.jit, static_argnames=("roll_is_np",))
def _double_conv_lanes_impl(x_lanes, packed, *, roll_is_np):
    b1m, sb1, b2m, sb2 = packed
    n, h, wcin = x_lanes.shape
    wcout = b2m.shape[2]
    nh = n * h

    x2d = x_lanes.reshape(nh, wcin).astype(jnp.float32)
    # 0/1 masks marking image-top / image-bottom rows (vertical pad + no cross-image bleed).
    r = jnp.arange(nh, dtype=jnp.int32) % h
    mtop = (r != 0).astype(jnp.float32)[:, None]          # (N*H, 1)
    mbot = (r != h - 1).astype(jnp.float32)[:, None]

    down_shift = 1 if roll_is_np else nh - 1
    up_shift = nh - 1 if roll_is_np else 1
    kernel = functools.partial(_double_conv_kernel,
                               down_shift=down_shift, up_shift=up_shift)

    vmem_spec = pl.BlockSpec(memory_space=pltpu.MemorySpace.VMEM)
    out = pl.pallas_call(
        kernel,
        out_shape=jax.ShapeDtypeStruct((nh, wcout), x_lanes.dtype),
        in_specs=[vmem_spec] * 7,
        out_specs=vmem_spec,
        compiler_params=pltpu.CompilerParams(
            vmem_limit_bytes=32 * 1024 * 1024),
    )(x2d, b1m, sb1, b2m, sb2, mtop, mbot)
    return out.reshape(n, h, wcout)


def double_conv_lanes(x_lanes, packed):
    """DoubleConv forward in the lane-dense (N, H, W*C) layout (chainable across blocks)."""
    return _double_conv_lanes_impl(x_lanes, packed, roll_is_np=_roll_matches_np_roll())


def double_conv_nchw(x_nchw, packed, c_out):
    """Convenience wrapper: NCHW in / NCHW out (layout change only at the module boundary)."""
    return lanes_to_nchw(double_conv_lanes(nchw_to_lanes(x_nchw), packed), c_out)


# ----------------------------------------------------------------------------- reference
def double_conv_ref(x, params):
    """Pure-JAX reference matching PyTorch eval-mode DoubleConv (NCHW)."""
    for (w, b, gamma, beta, mean, var) in params:
        x = lax.conv_general_dilated(
            x, w, window_strides=(1, 1), padding="SAME",
            dimension_numbers=("NCHW", "OIHW", "NCHW"))
        x = x + b[None, :, None, None]
        x = (x - mean[None, :, None, None]) / jnp.sqrt(var[None, :, None, None] + _EPS)
        x = x * gamma[None, :, None, None] + beta[None, :, None, None]
        x = jnp.maximum(x, 0.0)
    return x


def _make_layer_params(key, cin, cout):
    ks = jax.random.split(key, 6)
    w = 0.2 * jax.random.normal(ks[0], (cout, cin, 3, 3), jnp.float32)   # OIHW
    b = 0.1 * jax.random.normal(ks[1], (cout,), jnp.float32)
    gamma = 1.0 + 0.1 * jax.random.normal(ks[2], (cout,), jnp.float32)
    beta = 0.1 * jax.random.normal(ks[3], (cout,), jnp.float32)
    mean = 0.1 * jax.random.normal(ks[4], (cout,), jnp.float32)
    var = 1.0 + 0.5 * jax.random.uniform(ks[5], (cout,), jnp.float32)
    return (w, b, gamma, beta, mean, var)


if __name__ == "__main__":
    N, C_in, C_out, H, W = 2, 4, 8, 16, 16
    key = jax.random.PRNGKey(0)
    kx, k1, k2 = jax.random.split(key, 3)

    x = jax.random.normal(kx, (N, C_in, H, W), jnp.float32)   # PyTorch NCHW input
    params = [_make_layer_params(k1, C_in, C_out),
              _make_layer_params(k2, C_out, C_out)]
    ref = double_conv_ref(x, params)

    # f32 MXU-operand path (bit-for-bit comparable to the f32 reference).
    packed = prepare_params(params, W, compute_dtype=jnp.float32)    # module-init time
    out = jax.block_until_ready(double_conv_nchw(x, packed, C_out))
    assert out.shape == (N, C_out, H, W), out.shape
    max_err = float(jnp.max(jnp.abs(out - ref)))
    assert jnp.allclose(out, ref, atol=1e-3, rtol=1e-3), max_err

    # bf16 MXU-operand path (v6e/v7x): same kernel, bf16 banded weights + bf16 dot operands,
    # f32 accumulate + f32 BN/ReLU epilogue.  Looser tolerance reflects bf16 rounding only.
    packed_bf16 = prepare_params(params, W, compute_dtype=jnp.bfloat16)
    out_bf16 = jax.block_until_ready(double_conv_nchw(x, packed_bf16, C_out))
    max_err_bf16 = float(jnp.max(jnp.abs(out_bf16 - ref)))
    assert jnp.allclose(out_bf16, ref, atol=2e-1, rtol=1e-1), max_err_bf16

    print("KERNEL_OK")
</pallas_src>

<mosaic_0001>
module attributes {stable_mosaic.version = 11 : i64} {
  func.func @probe(%arg0: memref<8x128xf32, #tpu.memory_space<vmem>>, %arg1: memref<8x128xf32, #tpu.memory_space<vmem>>) attributes {dimension_semantics = [], scalar_prefetch = 0 : i64, scratch_operands = 0 : i64, tpu.core_type = #tpu.core_type<tc>} {
    %c0 = arith.constant 0 : index
    %c0_0 = arith.constant 0 : index
    %0 = vector.load %arg0[%c0, %c0_0] : memref<8x128xf32, #tpu.memory_space<vmem>>, vector<8x128xf32>
    %c1_i32 = arith.constant 1 : i32
    %1 = tpu.dynamic_rotate %0 by %c1_i32 dim 0 : vector<8x128xf32>, i32 -> vector<8x128xf32>
    %c0_1 = arith.constant 0 : index
    %c0_2 = arith.constant 0 : index
    %2 = vector.load %arg1[%c0_1, %c0_2] : memref<8x128xf32, #tpu.memory_space<vmem>>, vector<8x128xf32>
    tpu.vector_store %arg1[%c0_1, %c0_2], %1 {strides = array<i32>} : memref<8x128xf32, #tpu.memory_space<vmem>>, vector<8x128xf32>,
    return
  }
}

</mosaic_0001>

<bundles_post_ra>
// kernel: tpu_custom_call.1
= control target key start
LH: loop header
LB: loop body
LE: loop exit
PB: predicated region body
PF: predicated region fallthrough
CT: control target
= control target key end

     0   :  { %6 = vsyncpa [#allocation3], 0  ;;  %s125_s0 = inlined_call_operand.hbm [shape: f32[8,128], index: 0, kind: input, shape index: {}]   ;;  %s126_s1 = inlined_call_operand.hbm [shape: f32[8,128], index: 1, kind: output, shape index: {}]  }
   0x1   :  { %7 = vsyncpa [#allocation4], 0  ;;  %s89_s6 = smov [#allocation2]   ;;  %s41_s10 = scalar_lea.hbm %s125_s0, 128 }
   0x2   :  { %s14_s7 = sshll.u32 %s89_s6, 4  ;;  %p42_p0 = scmp.ne.s32.totalorder %s125_s0, %s41_s10  ;;  %s15_s7 = int_to_ptr.vmem [resolvable:$true] %s14_s7 }
   0x3   :  { %p45_p1 = scmp.lt.u32.totalorder %s41_s10, %s125_s0 }
   0x5   :  { %p47_p2 = pnand %p45_p1, %p42_p0 }
   0x7   :  { %50 = shalt.err (!%p47_p2)
}
   0x8   :  { %s51_s15 = scalar_lea.vmem %s15_s7, 128  ;;  %p56_p4 = scmp.lt.s32.totalorder %s15_s7, %s15_s7 }
   0x9   :  { %p52_p3 = scmp.ne.s32.totalorder %s15_s7, %s51_s15  ;;  %p57_p5 = scmp.lt.s32.totalorder %s51_s15, %s51_s15 }
   0xb   :  { %p58_p6 = por %p57_p5, %p56_p4 }
   0xd   :  { %p59_p7 = pnand %p58_p6, %p52_p3 }
   0xf   :  { %62 = shalt.err (!%p59_p7)
}
  0x10   :  { %17 = dma.hbm_to_vmem [thread:$0]  %s125_s0, 128, %s15_s7, [#allocation3]  }
  0x11   :  { %85 = dma.done.wait [#allocation3], 128  }
  0x12   :  { %86 = vsyncadd [#allocation3], 4294967168  ;;  %s90_s18 = smov [#allocation5]   ;;  %v21_v0 = vld [vmem:[#allocation2] sm:$0xff] }
  0x13   :  { %s30_s19 = sshll.u32 %s90_s18, 4  ;;  %v22_v1 = vrot.slane %v21_v0, 7  ;;  %s31_s19 = int_to_ptr.vmem [resolvable:$true] %s30_s19 }
  0x14   :  { %s63_s20 = scalar_lea.vmem %s31_s19, 128  ;;  %p68_p9 = scmp.lt.s32.totalorder %s31_s19, %s31_s19 }
  0x15   :  { %23 = vst [vmem:[#allocation5] sm:$0xff] %v22_v1  ;;  %p64_p8 = scmp.ne.s32.totalorder %s31_s19, %s63_s20  ;;  %p69_p10 = scmp.lt.s32.totalorder %s63_s20, %s63_s20 }
  0x17   :  { %p70_p11 = por %p69_p10, %p68_p9 }
  0x19   :  { %p71_p12 = pnand %p70_p11, %p64_p8 }
  0x1b   :  { %74 = shalt.err (!%p71_p12)
}
  0x1c   :  { %s75_s23 = scalar_lea.hbm %s126_s1, 128 }
  0x1d   :  { %p76_p13 = scmp.ne.s32.totalorder %s126_s1, %s75_s23  ;;  %p79_p0 = scmp.lt.u32.totalorder %s75_s23, %s126_s1 }
  0x1f   :  { %p81_p1 = pnand %p79_p0, %p76_p13 }
  0x21   :  { %84 = shalt.err (!%p81_p1)
}
  0x22   :  { %33 = dma.vmem_to_hbm [thread:$0]  %s31_s19, 128, %s126_s1, [#allocation4]  }
  0x23   :  { %87 = dma.done.wait [#allocation4], 128  }
  0x24   :  { %88 = vsyncadd [#allocation4], 4294967168 }
  0x25   :  { %37 = vsyncpa [#allocation3], 1 }
  0x26   :  { %38 = vsyncpa [#allocation4], 1 }

</bundles_post_ra>
